<compile_context>
chip_gen: v6e
topology: v6e:2x2x1
jax: 0.10.0
libtpu: 0.0.40
codegen_flags: <defaults>
</compile_context>

<pallas_src>
import functools
from typing import NamedTuple

import numpy as np
import jax
import jax.numpy as jnp
from jax.experimental import pallas as pl
from jax.experimental.pallas import tpu as pltpu


# ---------------------------------------------------------------------------
# helpers
# ---------------------------------------------------------------------------

def _round_up(x, m):
    return ((x + m - 1) // m) * m


_TM_CAP = 256          # dst-row tile cap (keep modest so v7x's 2 TCs can split)
_TK_CAP = 1024         # src (reduction) tile cap; raise on v5e/v6e for big graphs
_VMEM_LIMIT = 48 * 1024 * 1024   # fits v7x (64 MiB); v5e/v6e have 128 MiB headroom


class PreparedBlock(NamedTuple):
    a: jax.Array        # (nd_pad, ns_pad) bf16 exact 0/1 adjacency mask
    dinv: jax.Array     # (nd_pad, 1)      f32  1/max(in_degree, 1)
    n_dst: int
    n_src: int
    tm: int
    tk: int


class PreparedLayer(NamedTuple):
    wn: jax.Array       # (d_in_pad, d_out_pad) bf16, fc_neigh.weight^T padded
    ws: jax.Array       # (d_in_pad, d_out_pad) bf16, fc_self.weight^T  padded
    d_in: int
    d_out: int


def prepare_block(adj_mask):
    """adj_mask: (n_dst, n_src) exact 0/1 mask (dst x src). One-time prep."""
    n_dst, n_src = adj_mask.shape
    tm = min(_TM_CAP, _round_up(n_dst, 16))      # 16: bf16 sublane packing
    tk = min(_TK_CAP, _round_up(n_src, 128))     # 128: lane width
    nd_pad = _round_up(n_dst, tm)
    ns_pad = _round_up(n_src, tk)

    a_pad = jnp.zeros((nd_pad, ns_pad), jnp.bfloat16)
    a_pad = a_pad.at[:n_dst, :n_src].set(adj_mask.astype(jnp.bfloat16))

    deg = jnp.sum(adj_mask.astype(jnp.float32), axis=1, keepdims=True)
    dinv = 1.0 / jnp.maximum(deg, 1.0)           # DGL mean: 0-in-degree -> 0
    dinv_pad = jnp.zeros((nd_pad, 1), jnp.float32).at[:n_dst].set(dinv)

    return PreparedBlock(a_pad, dinv_pad, n_dst, n_src, tm, tk)


def prepare_layer(w_neigh, w_self):
    """PyTorch-layout (d_out, d_in) weights -> padded bf16 (d_in_pad, d_out_pad)."""
    d_out, d_in = w_neigh.shape
    d_in_pad = _round_up(d_in, 128)
    d_out_pad = _round_up(d_out, 128)
    wn = jnp.zeros((d_in_pad, d_out_pad), jnp.bfloat16)
    wn = wn.at[:d_in, :d_out].set(w_neigh.T.astype(jnp.bfloat16))
    ws = jnp.zeros((d_in_pad, d_out_pad), jnp.bfloat16)
    ws = ws.at[:d_in, :d_out].set(w_self.T.astype(jnp.bfloat16))
    return PreparedLayer(wn, ws, d_in, d_out)


def pad_features(x, d_pad):
    """Lane-pad features to d_pad columns, bf16 (rows handled in sage_layer)."""
    n, d = x.shape
    if d == d_pad and x.dtype == jnp.bfloat16:
        return x
    out = jnp.zeros((n, d_pad), jnp.bfloat16)
    return out.at[:, :d].set(x.astype(jnp.bfloat16))


def _ensure_rows(x_pad, rows):
    if x_pad.shape[0] >= rows:
        return x_pad
    return jnp.pad(x_pad, ((0, rows - x_pad.shape[0]), (0, 0)))


# ---------------------------------------------------------------------------
# kernel
# ---------------------------------------------------------------------------

def _sage_kernel(a_ref, xs_ref, xd_ref, dinv_ref, wn_ref, ws_ref, o_ref, acc_ref,
                 *, activation, d_out_valid):
    """One SAGEConv (mean aggregator) layer, tiled over (Nd, Ns).

    a_ref    : (tm, tk)              bf16  exact 0/1 adjacency tile (dst x src)
    xs_ref   : (tk, Din_pad)         bf16  source-feature tile (K stream)
    xd_ref   : (tm, Din_pad)         bf16  dst-feature tile (constant over k)
    dinv_ref : (tm, 1)               f32   1/deg row scaling
    wn_ref   : (Din_pad, Dout_pad)   bf16  fc_neigh.weight^T (VMEM-resident)
    ws_ref   : (Din_pad, Dout_pad)   bf16  fc_self.weight^T  (VMEM-resident)
    o_ref    : (tm, Dout_pad)        bf16/f32
    acc_ref  : (tm, Din_pad)         f32   VMEM accumulator for A @ X_src
    """
    k = pl.program_id(1)

    @pl.when(k == 0)
    def _():
        acc_ref[...] = jnp.zeros_like(acc_ref)

    # neighbor-sum accumulation over the K (src) axis: bf16 x bf16 -> f32.
    acc_ref[...] += jnp.dot(a_ref[...], xs_ref[...],
                            preferred_element_type=jnp.float32)

    @pl.when(k == pl.num_programs(1) - 1)
    def _():
        # exact mean: f32 1/deg applied after the full accumulation.
        h_neigh = (acc_ref[...] * dinv_ref[...]).astype(jnp.bfloat16)
        # two accumulating projection dots (no lane-axis concat / relayout).
        rst = jnp.dot(h_neigh, wn_ref[...], preferred_element_type=jnp.float32)
        rst = rst + jnp.dot(xd_ref[...], ws_ref[...],
                            preferred_element_type=jnp.float32)
        if activation == "relu":
            rst = jnp.maximum(rst, 0.0)
        elif activation == "log_softmax":
            # mask padded lanes so they don't corrupt the normalizer.
            lane = jax.lax.broadcasted_iota(jnp.int32, rst.shape, 1)
            masked = jnp.where(lane < d_out_valid, rst, jnp.float32(-1e30))
            m = jnp.max(masked, axis=-1, keepdims=True)
            lse = m + jnp.log(jnp.sum(jnp.exp(masked - m), axis=-1,
                                      keepdims=True))
            rst = rst - lse
        o_ref[...] = rst.astype(o_ref.dtype)


def sage_layer(block: PreparedBlock, x_pad, layer: PreparedLayer, *,
               activation, out_dtype):
    """One SAGEConv layer. Takes / returns lane+row-padded feature slabs.

    Padded output rows (>= n_dst) may contain garbage (finite); they only feed
    padded rows of downstream layers (A's padded columns are zero) and are
    cropped by the caller when a valid array is needed.
    """
    a_pad, dinv_pad = block.a, block.dinv
    nd_pad, ns_pad = a_pad.shape
    tm, tk = block.tm, block.tk
    d_in_pad, d_out_pad = layer.wn.shape
    assert x_pad.shape[1] == d_in_pad, (x_pad.shape, layer.wn.shape)
    x_pad = _ensure_rows(x_pad, max(nd_pad, ns_pad))

    grid = (nd_pad // tm, ns_pad // tk)   # reduction (src) axis LAST
    kern = functools.partial(_sage_kernel, activation=activation,
                             d_out_valid=layer.d_out)

    out_p = pl.pallas_call(
        kern,
        out_shape=jax.ShapeDtypeStruct((nd_pad, d_out_pad), out_dtype),
        grid_spec=pltpu.PrefetchScalarGridSpec(
            num_scalar_prefetch=0,
            grid=grid,
            in_specs=[
                pl.BlockSpec((tm, tk), lambda i, k: (i, k)),              # A tile
                pl.BlockSpec((tk, d_in_pad), lambda i, k: (k, 0)),        # X_src (K)
                pl.BlockSpec((tm, d_in_pad), lambda i, k: (i, 0)),        # X_dst (const over k)
                pl.BlockSpec((tm, 1), lambda i, k: (i, 0)),               # 1/deg
                pl.BlockSpec((d_in_pad, d_out_pad), lambda i, k: (0, 0)),  # Wn, resident
                pl.BlockSpec((d_in_pad, d_out_pad), lambda i, k: (0, 0)),  # Ws, resident
            ],
            out_specs=pl.BlockSpec((tm, d_out_pad), lambda i, k: (i, 0)),
            scratch_shapes=[pltpu.VMEM((tm, d_in_pad), jnp.float32)],
        ),
        compiler_params=pltpu.CompilerParams(
            dimension_semantics=("parallel", "arbitrary"),
            vmem_limit_bytes=_VMEM_LIMIT,
        ),
    )(a_pad, x_pad, x_pad, dinv_pad, layer.wn, layer.ws)
    return out_p


# ---------------------------------------------------------------------------
# GraphSAGE forward (stack of layers + cache-reuse plumbing)
# ---------------------------------------------------------------------------

def xavier_uniform(key, shape, gain):
    """Matches nn.init.xavier_uniform_ for a (fan_out, fan_in) Linear weight."""
    fan_out, fan_in = shape
    bound = gain * (6.0 / (fan_in + fan_out)) ** 0.5
    return jax.random.uniform(key, shape, jnp.float32, -bound, bound)


def graphsage_forward(prepared_params, prepared_blocks, x, prev_layer_repeat,
                      step, reuse_embedding):
    """GraphSAGE.forward: SAGEConv stack, cache-reuse at layer L-2, ReLU +
    (identity) dropout between layers, log_softmax fused into the last layer."""
    n_layers = len(prepared_params)
    cache_embedding = None

    # one-time lane padding of the input features (bf16).
    x_pad = pad_features(x, prepared_params[0].wn.shape[0])

    for i in range(n_layers - 1):
        blk = prepared_blocks[i]
        prm = prepared_params[i]
        if i == n_layers - 2:
            # SAGEConvCacheReuse (flag=0): pre-activation rst needed in f32 for
            # the scatter/gather bookkeeping -> crop to valid shape here.
            out_p = sage_layer(blk, x_pad, prm, activation="none",
                               out_dtype=jnp.float32)
            rst = out_p[:blk.n_dst, :prm.d_out]
            # --- cache-reuse index plumbing (plain JAX / numpy glue) ---
            reuse_indices = prev_layer_repeat[step][1]
            if len(reuse_indices) > 0:
                full_len = rst.shape[0] + len(reuse_indices)
                unprune = np.delete(np.arange(full_len), reuse_indices)
                full = jnp.zeros((full_len, rst.shape[1]), jnp.float32)
                full = full.at[np.asarray(unprune)].set(rst)
                full = full.at[np.asarray(reuse_indices)].set(reuse_embedding)
                rst = full
            if (step + 1 < len(prev_layer_repeat)
                    and len(prev_layer_repeat[step + 1][0]) > 0):
                cache_indices = np.asarray(prev_layer_repeat[step + 1][0])
                cache_embedding = rst[cache_indices]
            else:
                cache_embedding = jnp.zeros((0, rst.shape[1]), jnp.float32)
            # activation from GraphSAGE.forward (dropout = identity, eval);
            # re-pad for the next layer.
            x_act = jnp.maximum(rst, 0.0)
            x_pad = pad_features(x_act, prepared_params[i + 1].wn.shape[0])
        else:
            # plain SAGEConv: ReLU fused in-kernel; bf16 padded output is
            # carried straight into the next layer (no crop / re-pad passes).
            x_pad = sage_layer(blk, x_pad, prm, activation="relu",
                               out_dtype=jnp.bfloat16)

    # final SAGEConv layer with fused, padding-masked log_softmax(dim=-1).
    blk = prepared_blocks[-1]
    prm = prepared_params[-1]
    out_p = sage_layer(blk, x_pad, prm, activation="log_softmax",
                       out_dtype=jnp.float32)
    out = out_p[:blk.n_dst, :prm.d_out]
    return out, cache_embedding


# ---------------------------------------------------------------------------
# demo
# ---------------------------------------------------------------------------

if __name__ == "__main__":
    key = jax.random.PRNGKey(0)
    keys = jax.random.split(key, 16)

    in_feats, hidden_feats, out_feats = 32, 32, 8
    num_layers = 3  # layers: SAGEConv, SAGEConvCacheReuse, SAGEConv
    n_src = [64, 32, 16]
    n_dst = [32, 16, 8]

    gain = 2.0 ** 0.5  # nn.init.calculate_gain('relu')
    layer_dims = [(in_feats, hidden_feats), (hidden_feats, hidden_feats),
                  (hidden_feats, out_feats)]
    params = []
    for li, (din, dout) in enumerate(layer_dims):
        w_neigh = xavier_uniform(keys[2 * li], (dout, din), gain)     # fc_neigh.weight
        w_self = xavier_uniform(keys[2 * li + 1], (dout, din), gain)  # fc_self.weight
        params.append((w_neigh, w_self))

    # random 0/1 block adjacency masks (dst x src).
    adj = [jax.random.bernoulli(keys[8 + i], 0.3,
                                (n_dst[i], n_src[i])).astype(jnp.float32)
           for i in range(num_layers)]
    x = jax.random.normal(keys[12], (n_src[0], in_feats), jnp.float32)

    # One-time preparation (hoisted out of the forward pass): padded bf16
    # adjacency masks + f32 1/deg vectors, padded bf16 projection weights.
    prepared_blocks = [prepare_block(a) for a in adj]
    prepared_params = [prepare_layer(wn, ws) for (wn, ws) in params]

    # prev_layer_repeat[step][1] = reuse_indices (empty here);
    # prev_layer_repeat[step+1][0] = cache_indices for the embedding cache.
    prev_layer_repeat = [([], []), ([0, 1, 2], [])]
    step = 0
    reuse_embedding = jnp.zeros((0, hidden_feats), jnp.float32)

    out, cache_embedding = graphsage_forward(
        prepared_params, prepared_blocks, x, prev_layer_repeat, step,
        reuse_embedding)
    jax.block_until_ready(out)
    jax.block_until_ready(cache_embedding)

    assert out.shape == (n_dst[-1], out_feats)
    assert cache_embedding.shape == (3, hidden_feats)
    print("KERNEL_OK")
</pallas_src>

<mosaic_0001>
module attributes {stable_mosaic.version = 11 : i64} {
  func.func @_sage_kernel(%arg0: i32, %arg1: i32, %arg2: memref<32x128xbf16, #tpu.memory_space<vmem>>, %arg3: memref<128x128xbf16, #tpu.memory_space<vmem>>, %arg4: memref<32x128xbf16, #tpu.memory_space<vmem>>, %arg5: memref<32x1xf32, #tpu.memory_space<vmem>>, %arg6: memref<128x128xbf16, #tpu.memory_space<vmem>>, %arg7: memref<128x128xbf16, #tpu.memory_space<vmem>>, %arg8: memref<32x128xbf16, #tpu.memory_space<vmem>>, %arg9: memref<32x128xf32, #tpu.memory_space<vmem>>) attributes {dimension_semantics = [#tpu.dimension_semantics<parallel>, #tpu.dimension_semantics<arbitrary>], iteration_bounds = array<i64: 1, 1>, scalar_prefetch = 0 : i64, scratch_operands = 1 : i64, tpu.core_type = #tpu.core_type<tc>, window_params = [{transform_indices = @transform_0, window_bounds = array<i64: 32, 128>}, {transform_indices = @transform_1, window_bounds = array<i64: 128, 128>}, {transform_indices = @transform_2, window_bounds = array<i64: 32, 128>}, {transform_indices = @transform_3, window_bounds = array<i64: 32, 1>}, {pipeline_mode = #tpu.pipeline_mode<synchronous>, transform_indices = @transform_4, window_bounds = array<i64: 128, 128>}, {pipeline_mode = #tpu.pipeline_mode<synchronous>, transform_indices = @transform_5, window_bounds = array<i64: 128, 128>}, {transform_indices = @transform_6, window_bounds = array<i64: 32, 128>}]} {
    %c0_i32 = arith.constant 0 : i32
    %0 = arith.cmpi eq, %arg1, %c0_i32 : i32
    %1 = arith.extui %0 : i1 to i32
    %c0_i32_0 = arith.constant 0 : i32
    %2 = arith.cmpi ne, %1, %c0_i32_0 : i32
    scf.if %2 {
      %cst_10 = arith.constant 0.000000e+00 : f32
      %12 = vector.broadcast %cst_10 : f32 to vector<32x128xf32>
      %c0_11 = arith.constant 0 : index
      %c0_12 = arith.constant 0 : index
      %13 = vector.load %arg9[%c0_11, %c0_12] : memref<32x128xf32, #tpu.memory_space<vmem>>, vector<32x128xf32>
      tpu.vector_store %arg9[%c0_11, %c0_12], %12 {strides = array<i32>} : memref<32x128xf32, #tpu.memory_space<vmem>>, vector<32x128xf32>,
    } else {
    }
    %c0 = arith.constant 0 : index
    %c0_1 = arith.constant 0 : index
    %3 = vector.load %arg9[%c0, %c0_1] : memref<32x128xf32, #tpu.memory_space<vmem>>, vector<32x128xf32>
    %c0_2 = arith.constant 0 : index
    %c0_3 = arith.constant 0 : index
    %4 = vector.load %arg2[%c0_2, %c0_3] : memref<32x128xbf16, #tpu.memory_space<vmem>>, vector<32x128xbf16>
    %c0_4 = arith.constant 0 : index
    %c0_5 = arith.constant 0 : index
    %5 = vector.load %arg3[%c0_4, %c0_5] : memref<128x128xbf16, #tpu.memory_space<vmem>>, vector<128x128xbf16>
    %cst = arith.constant dense<0.000000e+00> : vector<32x128xf32>
    %6 = tpu.matmul %4, %5, %cst {dimension_numbers = #tpu.dot_dimension_numbers<[1], [0], [0], [1], [0, 0, 1, 1], [], []>} : vector<32x128xbf16>, vector<128x128xbf16>, vector<32x128xf32> -> vector<32x128xf32>
    %7 = arith.addf %3, %6 : vector<32x128xf32>
    %c0_6 = arith.constant 0 : index
    %c0_7 = arith.constant 0 : index
    %8 = vector.load %arg9[%c0_6, %c0_7] : memref<32x128xf32, #tpu.memory_space<vmem>>, vector<32x128xf32>
    tpu.vector_store %arg9[%c0_6, %c0_7], %7 {strides = array<i32>} : memref<32x128xf32, #tpu.memory_space<vmem>>, vector<32x128xf32>,
    %c0_i32_8 = arith.constant 0 : i32
    %9 = arith.cmpi eq, %arg1, %c0_i32_8 : i32
    %10 = arith.extui %9 : i1 to i32
    %c0_i32_9 = arith.constant 0 : i32
    %11 = arith.cmpi ne, %10, %c0_i32_9 : i32
    scf.if %11 {
      %c0_10 = arith.constant 0 : index
      %c0_11 = arith.constant 0 : index
      %12 = vector.load %arg9[%c0_10, %c0_11] : memref<32x128xf32, #tpu.memory_space<vmem>>, vector<32x128xf32>
      %c0_12 = arith.constant 0 : index
      %c0_13 = arith.constant 0 : index
      %13 = vector.load %arg5[%c0_12, %c0_13] : memref<32x1xf32, #tpu.memory_space<vmem>>, vector<32x1xf32>
      %14 = vector.broadcast %13 : vector<32x1xf32> to vector<32x128xf32>
      %15 = arith.mulf %12, %14 : vector<32x128xf32>
      %16 = arith.truncf %15 : vector<32x128xf32> to vector<32x128xbf16>
      %c0_14 = arith.constant 0 : index
      %c0_15 = arith.constant 0 : index
      %17 = vector.load %arg6[%c0_14, %c0_15] : memref<128x128xbf16, #tpu.memory_space<vmem>>, vector<128x128xbf16>
      %cst_16 = arith.constant dense<0.000000e+00> : vector<32x128xf32>
      %18 = tpu.matmul %16, %17, %cst_16 {dimension_numbers = #tpu.dot_dimension_numbers<[1], [0], [0], [1], [0, 0, 1, 1], [], []>} : vector<32x128xbf16>, vector<128x128xbf16>, vector<32x128xf32> -> vector<32x128xf32>
      %c0_17 = arith.constant 0 : index
      %c0_18 = arith.constant 0 : index
      %19 = vector.load %arg4[%c0_17, %c0_18] : memref<32x128xbf16, #tpu.memory_space<vmem>>, vector<32x128xbf16>
      %c0_19 = arith.constant 0 : index
      %c0_20 = arith.constant 0 : index
      %20 = vector.load %arg7[%c0_19, %c0_20] : memref<128x128xbf16, #tpu.memory_space<vmem>>, vector<128x128xbf16>
      %cst_21 = arith.constant dense<0.000000e+00> : vector<32x128xf32>
      %21 = tpu.matmul %19, %20, %cst_21 {dimension_numbers = #tpu.dot_dimension_numbers<[1], [0], [0], [1], [0, 0, 1, 1], [], []>} : vector<32x128xbf16>, vector<128x128xbf16>, vector<32x128xf32> -> vector<32x128xf32>
      %22 = arith.addf %18, %21 : vector<32x128xf32>
      %cst_22 = arith.constant 0.000000e+00 : f32
      %23 = vector.broadcast %cst_22 : f32 to vector<32x128xf32>
      %24 = arith.maximumf %22, %23 : vector<32x128xf32>
      %25 = arith.truncf %24 : vector<32x128xf32> to vector<32x128xbf16>
      %c0_23 = arith.constant 0 : index
      %c0_24 = arith.constant 0 : index
      %26 = vector.load %arg8[%c0_23, %c0_24] : memref<32x128xbf16, #tpu.memory_space<vmem>>, vector<32x128xbf16>
      tpu.vector_store %arg8[%c0_23, %c0_24], %25 {strides = array<i32>} : memref<32x128xbf16, #tpu.memory_space<vmem>>, vector<32x128xbf16>,
    } else {
    }
    return
  }
  func.func @transform_0(%arg0: i32, %arg1: i32) -> (i32, i32) {
    %c0_i32 = arith.constant 0 : i32
    return %arg0, %arg1 : i32, i32
  }
  func.func @transform_1(%arg0: i32, %arg1: i32) -> (i32, i32) {
    %c0_i32 = arith.constant 0 : i32
    %c0_i32_0 = arith.constant 0 : i32
    return %arg1, %c0_i32 : i32, i32
  }
  func.func @transform_2(%arg0: i32, %arg1: i32) -> (i32, i32) {
    %c0_i32 = arith.constant 0 : i32
    %c0_i32_0 = arith.constant 0 : i32
    return %arg0, %c0_i32 : i32, i32
  }
  func.func @transform_3(%arg0: i32, %arg1: i32) -> (i32, i32) {
    %c0_i32 = arith.constant 0 : i32
    %c0_i32_0 = arith.constant 0 : i32
    return %arg0, %c0_i32 : i32, i32
  }
  func.func @transform_4(%arg0: i32, %arg1: i32) -> (i32, i32) {
    %c0_i32 = arith.constant 0 : i32
    %c0_i32_0 = arith.constant 0 : i32
    %c0_i32_1 = arith.constant 0 : i32
    return %c0_i32, %c0_i32_0 : i32, i32
  }
  func.func @transform_5(%arg0: i32, %arg1: i32) -> (i32, i32) {
    %c0_i32 = arith.constant 0 : i32
    %c0_i32_0 = arith.constant 0 : i32
    %c0_i32_1 = arith.constant 0 : i32
    return %c0_i32, %c0_i32_0 : i32, i32
  }
  func.func @transform_6(%arg0: i32, %arg1: i32) -> (i32, i32) {
    %c0_i32 = arith.constant 0 : i32
    %c0_i32_0 = arith.constant 0 : i32
    return %arg0, %c0_i32 : i32, i32
  }
}

</mosaic_0001>

<bundles_post_ra>
// kernel: tpu_custom_call.1
= control target key start
LH: loop header
LB: loop body
LE: loop exit
PB: predicated region body
PF: predicated region fallthrough
CT: control target
= control target key end

     0   :  { %11 = vsyncpa [#allocation4], 0  ;;  %s925_s0 = inlined_call_operand.vmem [shape: bf16[32,128], index: 0, kind: input, shape index: {}]   ;;  %s926_s1 = inlined_call_operand.hbm [shape: bf16[128,128], index: 1, kind: input, shape index: {}]   ;;  %s927_s2 = inlined_call_operand.hbm [shape: bf16[128,128], index: 2, kind: input, shape index: {}]   ;;  %s928_s3 = inlined_call_operand.vmem [shape: f32[32,1], index: 3, kind: input, shape index: {}]   ;;  %s929_s4 = inlined_call_operand.hbm [shape: bf16[128,128], index: 4, kind: input, shape index: {}]   ;;  %s930_s5 = inlined_call_operand.hbm [shape: bf16[128,128], index: 5, kind: input, shape index: {}]   ;;  %s931_s6 = inlined_call_operand.hbm [shape: bf16[32,128], index: 6, kind: output, shape index: {}]  }
   0x1   :  { %12 = vsyncpa [#allocation7], 0 }
   0x2   :  { %13 = vsyncpa [#allocation10], 0 }
   0x3   :  { %14 = vsyncpa [#allocation5], 0  ;;  %s834_s21 = smov [#allocation6]   ;;  %s835_s23 = smov [#allocation3]  }
   0x4   :  { %s34_s22 = sshll.u32 %s834_s21, 4  ;;  %s22_s24 = sshll.u32 %s835_s23, 4  ;;  %s35_s22 = int_to_ptr.vmem [resolvable:$true] %s34_s22  ;;  %s23_s24 = int_to_ptr.vmem [resolvable:$true] %s22_s24 }
   0x5   :  { %s734_s25 = scalar_lea.vmem %s35_s22, 256  ;;  %p739_p1 = scmp.lt.s32.totalorder %s35_s22, %s35_s22 }
   0x6   :  { %p735_p0 = scmp.ne.s32.totalorder %s35_s22, %s734_s25  ;;  %p740_p2 = scmp.lt.s32.totalorder %s734_s25, %s734_s25 }
   0x8   :  { %p741_p3 = por %p740_p2, %p739_p1 }
   0xa   :  { %p742_p4 = pnand %p741_p3, %p735_p0 }
   0xc   :  { %745 = shalt.err (!%p742_p4)
}
   0xd   :  { %s836_s26 = smov 64   ;;  %s837_s27 = smov 4  }
   0xe   :  { %40 = dma.hbm_to_vmem [thread:$0]  %s927_s2, 256, %s35_s22, [#allocation7], %s836_s26, %s836_s26, %s837_s27  }
   0xf   :  { %s754_s30 = scalar_lea.vmem %s23_s24, 1024  ;;  %p759_p6 = scmp.lt.s32.totalorder %s23_s24, %s23_s24 }
  0x10   :  { %p755_p5 = scmp.ne.s32.totalorder %s23_s24, %s754_s30  ;;  %p760_p7 = scmp.lt.s32.totalorder %s754_s30, %s754_s30 }
  0x12   :  { %p761_p8 = por %p760_p7, %p759_p6 }
  0x14   :  { %p762_p9 = pnand %p761_p8, %p755_p5 }
  0x16   :  { %765 = shalt.err (!%p762_p9)
}
  0x17   :  { %28 = dma.hbm_to_vmem [thread:$0]  %s926_s1, 1024, %s23_s24, [#allocation4], %s836_s26, %s836_s26, %s837_s27  }
  0x18   :  { %s838_s9 = smov [#allocation8]   ;;  %s839_s11 = smov [#allocation9]  }
  0x19   :  { %s48_s10 = sshll.u32 %s838_s9, 4  ;;  %s60_s12 = sshll.u32 %s839_s11, 4  ;;  %s49_s10 = int_to_ptr.vmem [resolvable:$true] %s48_s10  ;;  %s61_s12 = int_to_ptr.vmem [resolvable:$true] %s60_s12 }
  0x1a   :  { %s774_s2 = scalar_lea.vmem %s49_s10, 1024  ;;  %p779_p11 = scmp.lt.s32.totalorder %s49_s10, %s49_s10 }
  0x1b   :  { %p775_p10 = scmp.ne.s32.totalorder %s49_s10, %s774_s2  ;;  %p780_p12 = scmp.lt.s32.totalorder %s774_s2, %s774_s2 }
  0x1d   :  { %p781_p13 = por %p780_p12, %p779_p11 }
  0x1f   :  { %p782_p0 = pnand %p781_p13, %p775_p10 }
  0x21   :  { %785 = shalt.err (!%p782_p0)
}
  0x22   :  { %54 = dma.hbm_to_vmem [thread:$0]  %s929_s4, 1024, %s49_s10, [#allocation7], %s836_s26, %s836_s26, %s837_s27  }
  0x23   :  { %s794_s1 = scalar_lea.vmem %s61_s12, 1024  ;;  %p799_p2 = scmp.lt.s32.totalorder %s61_s12, %s61_s12 }
  0x24   :  { %p795_p1 = scmp.ne.s32.totalorder %s61_s12, %s794_s1  ;;  %p800_p3 = scmp.lt.s32.totalorder %s794_s1, %s794_s1 }
  0x26   :  { %p801_p4 = por %p800_p3, %p799_p2 }
  0x28   :  { %p802_p5 = pnand %p801_p4, %p795_p1 }
  0x2a   :  { %805 = shalt.err (!%p802_p5)
}
  0x2b   :  { %66 = dma.hbm_to_vmem [thread:$0]  %s930_s5, 1024, %s61_s12, [#allocation10], %s836_s26, %s836_s26, %s837_s27  }
  0x2c   :  { %826 = dma.done.wait [#allocation4], 1024  }
  0x2d   :  { %827 = vsyncadd [#allocation4], 4294966272 }
  0x2e   :  { %828 = dma.done.wait [#allocation7], 1280  }
  0x2f   :  { %829 = vsyncadd [#allocation7], 4294966016 }
  0x30   :  { %830 = dma.done.wait [#allocation10], 1024  }
  0x31   :  { %831 = vsyncadd [#allocation10], 4294966272  ;;  %v840_v0 = vmov 0   ;;  %v698_v1 = vld [vmem:[#allocation3 + $0x38] sm:$0xff]   ;;  %v699_v2 = vld [vmem:[#allocation3 + $0x30] sm:$0xff]  }
  0x32   :  { %696 = vset.pattern.permute.xlu0 %v840_v0  ;;  %697 = vset.pattern.permute.xlu1 %v840_v0  ;;  %v700_v3 = vld [vmem:[#allocation3 + $0x28] sm:$0xff]   ;;  %v701_v4 = vld [vmem:[#allocation3 + $0x20] sm:$0xff]   ;;  %v702_v6 = vld [vmem:[#allocation3 + $0x18] sm:$0xff]  }
  0x33   :  { %628 = vmatprep.subr.bf16.mxu0 %v698_v1  ;;  %v706_v5 = vld [vmem:[%s925_s0] sm:$0xff]   ;;  %v238_v8 = vld [vmem:[%s928_s3 + $0x10] sm:$0xff]  ;;  %v237_v9 = vld [vmem:[%s928_s3 + $0x8] sm:$0xff] }
  0x34   :  { %629 = vmatpush3.bf16.msra.mxu0 %v698_v1  ;;  %644 = vmatprep.mubr.bf16.mxu0 %v706_v5  ;;  %v236_v7 = vld [vmem:[%s928_s3] sm:$0xff]  ;;  %v708_v10 = vld [vmem:[#allocation9 + $0x38] sm:$0xff]   ;;  %v239_v11 = vld [vmem:[%s928_s3 + $0x18] sm:$0xff] }
  0x35   :  { %630 = vmatprep.subr.bf16.mxu0 %v699_v2  ;;  %242 = vperm.xlu0 %696, %v236_v7   ;;  %v709_v12 = vld [vmem:[#allocation9 + $0x30] sm:$0xff]   ;;  %v703_v13 = vld [vmem:[#allocation3 + $0x10] sm:$0xff]   ;;  %v711_v14 = vld [vmem:[#allocation9 + $0x28] sm:$0xff]  }
  0x36   :  { %252 = vperm.xlu1 %697, %v238_v8   ;;  %648 = vmatprep.subr.bf16.mxu1 %v708_v10  ;;  %v704_v15 = vld [vmem:[#allocation3 + $0x8] sm:$0xff]   ;;  %v713_v16 = vld [vmem:[#allocation9 + $0x20] sm:$0xff]   ;;  %v705_v17 = vld [vmem:[#allocation3] sm:$0xff]  }
  0x37   :  { %649 = vmatpush3.bf16.msra.mxu1 %v708_v10  ;;  %v715_v18 = vld [vmem:[#allocation9 + $0x18] sm:$0xff]   ;;  %v717_v21 = vld [vmem:[#allocation9 + $0x10] sm:$0xff]   ;;  %v719_v23 = vld [vmem:[#allocation9 + $0x8] sm:$0xff]  }
  0x38   :  { %631 = vmatpush3.bf16.msra.mxu0 %v699_v2  ;;  %650 = vmatprep.subr.bf16.mxu1 %v709_v12  ;;  %v710_v19 = vld [vmem:[#allocation8 + $0x38] sm:$0xff]   ;;  %v712_v22 = vld [vmem:[#allocation8 + $0x30] sm:$0xff]   ;;  %v714_v24 = vld [vmem:[#allocation8 + $0x28] sm:$0xff]  }
  0x39   :  { %632 = vmatprep.subr.bf16.mxu0 %v700_v3  ;;  %247 = vperm.xlu0 %696, %v237_v9   ;;  %v707_v20 = vld [vmem:[%s925_s0 + $0x8] sm:$0xff]   ;;  %v716_v25 = vld [vmem:[#allocation8 + $0x20] sm:$0xff]   ;;  %v720_v27 = vld [vmem:[#allocation8 + $0x10] sm:$0xff]   ;;  %s841_s0 = smov [#allocation11]  }
  0x3a   :  { %257 = vperm.xlu1 %697, %v239_v11   ;;  %v718_v26 = vld [vmem:[#allocation8 + $0x18] sm:$0xff]   ;;  %v721_v28 = vld [vmem:[#allocation9] sm:$0xff]   ;;  %v722_v29 = vld [vmem:[#allocation8 + $0x8] sm:$0xff]   ;;  %s537_s28 = sshll.u32 %s841_s0, 4  ;;  %s538_s28 = int_to_ptr.vmem [resolvable:$true] %s537_s28 }
  0x3b   :  { %651 = vmatpush3.bf16.msra.mxu1 %v709_v12  ;;  %v723_v30 = vld [vmem:[#allocation6] sm:$0xff]   ;;  %v724_v31 = vld [vmem:[#allocation6 + $0x8] sm:$0xff]   ;;  %v725_v32 = vld [vmem:[#allocation8] sm:$0xff]   ;;  %s806_s29 = scalar_lea.vmem %s538_s28, 256  ;;  %p811_p7 = scmp.lt.s32.totalorder %s538_s28, %s538_s28 }
  0x3c   :  { %633 = vmatpush3.bf16.msra.mxu0 %v700_v3  ;;  %652 = vmatprep.subr.bf16.mxu1 %v711_v14  ;;  %p807_p6 = scmp.ne.s32.totalorder %s538_s28, %s806_s29  ;;  %p812_p8 = scmp.lt.s32.totalorder %s806_s29, %s806_s29 }
  0x3d   :  { %634 = vmatprep.subr.bf16.mxu0 %v701_v4  ;;  %664 = vmatprep.mubr.bf16.mxu1 %v723_v30 }
  0x3e   :  { %p813_p9 = por %p812_p8, %p811_p7 }
  0x3f   :  { %653 = vmatpush3.bf16.msra.mxu1 %v711_v14 }
  0x40   :  { %635 = vmatpush3.bf16.msra.mxu0 %v701_v4  ;;  %654 = vmatprep.subr.bf16.mxu1 %v713_v16  ;;  %p814_p10 = pnand %p813_p9, %p807_p6 }
  0x41   :  { %636 = vmatprep.subr.bf16.mxu0 %v702_v6 }
  0x43   :  { %655 = vmatpush3.bf16.msra.mxu1 %v713_v16 }
  0x44   :  { %637 = vmatpush3.bf16.msra.mxu0 %v702_v6  ;;  %656 = vmatprep.subr.bf16.mxu1 %v715_v18 }
  0x45   :  { %638 = vmatprep.subr.bf16.mxu0 %v703_v13 }
  0x47   :  { %657 = vmatpush3.bf16.msra.mxu1 %v715_v18 }
  0x48   :  { %639 = vmatpush3.bf16.msra.mxu0 %v703_v13  ;;  %658 = vmatprep.subr.bf16.mxu1 %v717_v21 }
  0x49   :  { %640 = vmatprep.subr.bf16.mxu0 %v704_v15 }
  0x4b   :  { %659 = vmatpush3.bf16.msra.mxu1 %v717_v21 }
  0x4c   :  { %641 = vmatpush3.bf16.msra.mxu0 %v704_v15  ;;  %660 = vmatprep.subr.bf16.mxu1 %v719_v23 }
  0x4d   :  { %642 = vmatprep.subr.bf16.mxu0 %v705_v17 }
  0x4f   :  { %661 = vmatpush3.bf16.msra.mxu1 %v719_v23 }
  0x50   :  { %643 = vmatpush3.bf16.msra.mxu0 %v705_v17  ;;  %662 = vmatprep.subr.bf16.mxu1 %v721_v28 }
  0x51   :  { %668 = vmatprep.subr.bf16.mxu0 %v710_v19 }
  0x53   :  { %645 = vmatmul.mubr.bf16.vlgmr.msra.gmra.mxu0 %v707_v20  ;;  %663 = vmatpush3.bf16.msra.mxu1 %v721_v28 }
  0x54   :  { %669 = vmatpush3.bf16.msra.mxu0 %v710_v19 }
  0x55   :  { %670 = vmatprep.subr.bf16.mxu0 %v712_v22 }
  0x56   :  { %665 = vmatmul.mubr.bf16.vlgmr.msra.gmra.mxu1 %v724_v31 }
  0x58   :  { %671 = vmatpush3.bf16.msra.mxu0 %v712_v22 }
  0x59   :  { %672 = vmatprep.subr.bf16.mxu0 %v714_v24 }
  0x5c   :  { %673 = vmatpush3.bf16.msra.mxu0 %v714_v24 }
  0x5d   :  { %674 = vmatprep.subr.bf16.mxu0 %v716_v25 }
  0x60   :  { %675 = vmatpush3.bf16.msra.mxu0 %v716_v25 }
  0x61   :  { %676 = vmatprep.subr.bf16.mxu0 %v718_v26 }
  0x64   :  { %677 = vmatpush3.bf16.msra.mxu0 %v718_v26 }
  0x65   :  { %678 = vmatprep.subr.bf16.mxu0 %v720_v27 }
  0x68   :  { %679 = vmatpush3.bf16.msra.mxu0 %v720_v27 }
  0x69   :  { %680 = vmatprep.subr.bf16.mxu0 %v722_v29 }
  0x6c   :  { %681 = vmatpush3.bf16.msra.mxu0 %v722_v29 }
  0x6d   :  { %682 = vmatprep.subr.bf16.mxu0 %v725_v32 }
  0x70   :  { %683 = vmatpush3.bf16.msra.mxu0 %v725_v32 }
  0xb0   :  { %v243_v34 = vpop.permute.xlu0 %242 }
  0xb1   :  { %v253_v33 = vpop.permute.xlu1 %252 }
  0xb4   :  { %v248_v39 = vpop.permute.xlu0 %247 }
  0xb5   :  { %v258_v37 = vpop.permute.xlu1 %257 }
 0x113   :  { %v646_v35 = vpop.f32.mrf.mxu0 }
 0x114   :  { %v262_v44 = vmul.f32 %v646_v35, %v253_v33 }
 0x115   :  { %v206_v36 = vpop.f32.mrf.mxu0 }
 0x116   :  { %v260_v42 = vmul.f32 %v243_v34, %v206_v36  ;;  %v666_v47 = vpop.f32.mrf.mxu1 }
 0x117   :  { %v647_v38 = vpop.f32.mrf.mxu0 }
 0x118   :  { %v263_v40 = vmul.f32 %v647_v38, %v258_v37  ;;  %v396_v48 = vpop.f32.mrf.mxu1 }
 0x119   :  { %v209_v41 = vpop.f32.mrf.mxu0 }
 0x11a   :  { %v261_v43 = vmul.f32 %v248_v39, %v209_v41  ;;  %v265_v46 = vpack.c.bf16 %v263_v40, %v262_v44  ;;  %v667_v50 = vpop.f32.mrf.mxu1 }
 0x11c   :  { %v264_v45 = vpack.c.bf16 %v261_v43, %v260_v42  ;;  %v399_v56 = vpop.f32.mrf.mxu1 }
 0x11e   :  { %684 = vmatprep.mubr.bf16.mxu0 %v264_v45 }
 0x11f   :  { %685 = vmatmul.mubr.bf16.vlgmr.msra.gmra.mxu0 %v265_v46 }
 0x1df   :  { %v686_v49 = vpop.f32.mrf.mxu0 }
 0x1e0   :  { %v502_v52 = vadd.f32 %v686_v49, %v666_v47 }
 0x1e1   :  { %v493_v51 = vpop.f32.mrf.mxu0 }
 0x1e2   :  { %v494_v54 = vadd.f32 %v493_v51, %v396_v48  ;;  %v510_v58 = vmax.f32 %v502_v52, 0.0 }
 0x1e3   :  { %v687_v53 = vpop.f32.mrf.mxu0 }
 0x1e4   :  { %v505_v55 = vadd.f32 %v687_v53, %v667_v50  ;;  %v508_v61 = vmax.f32 %v494_v54, 0.0 }
 0x1e5   :  { %v496_v57 = vpop.f32.mrf.mxu0 }
 0x1e6   :  { %v511_v59 = vmax.f32 %v505_v55, 0.0  ;;  %v497_v60 = vadd.f32 %v496_v57, %v399_v56 }
 0x1e8   :  { %v595_v62 = vpack.c.bf16 %v511_v59, %v510_v58  ;;  %v509_v63 = vmax.f32 %v497_v60, 0.0 }
 0x1ea   :  { %597 = vst [vmem:[#allocation11 + $0x8] sm:$0xff] %v595_v62   ;;  %v590_v0 = vpack.c.bf16 %v509_v63, %v508_v61 }
 0x1ec   :  { %591 = vst [vmem:[#allocation11] sm:$0xff] %v590_v0  }
 0x1ed   :  { %817 = shalt.err (!%p814_p10)
}
 0x1ee   :  { %543 = dma.vmem_to_hbm [thread:$0]  %s538_s28, 256, %s931_s6, [#allocation5], %s836_s26, %s836_s26, %s837_s27  }
 0x1ef   :  { %832 = dma.done.wait [#allocation5], 256  }
 0x1f0   :  { %833 = vsyncadd [#allocation5], 4294967040 }
 0x1f1   :  { %547 = vsyncpa [#allocation4], 1 }
 0x1f2   :  { %548 = vsyncpa [#allocation7], 1 }
 0x1f3   :  { %549 = vsyncpa [#allocation10], 1 }
 0x1f4   :  { %550 = vsyncpa [#allocation5], 1 }

</bundles_post_ra>
